<compile_context>
chip_gen: v6e
topology: v6e:2x2x1
jax: 0.10.0
libtpu: 0.0.40
codegen_flags: <defaults>
</compile_context>

<pallas_src>
import functools

import jax
import jax.numpy as jnp
from jax.experimental import pallas as pl
from jax.experimental.pallas import tpu as pltpu

EPS = 1e-5
_DEFAULT_PHYS_VMEM = 64 << 20  # conservative fallback: v7x per-TC VMEM


# ----------------------------- planning helpers ----------------------------- #

def _roundup(x, m):
    return ((x + m - 1) // m) * m


def _padded_tile_bytes(shape, itemsize):
    """VMEM footprint of one block: second-minor padded to the sublane tile,
    minor padded to 128 lanes."""
    sublane = {4: 8, 2: 16, 1: 32}.get(itemsize, 8)
    lead = 1
    for d in shape[:-2]:
        lead *= int(d)
    d1 = int(shape[-2]) if len(shape) >= 2 else 1
    d2 = int(shape[-1])
    return lead * _roundup(d1, sublane) * _roundup(d2, 128) * itemsize


def _physical_vmem_bytes():
    get_info = getattr(pltpu, "get_tpu_info", None)
    if get_info is not None:
        try:
            info = get_info()
            for name in ("vmem_capacity_bytes", "vmem_bytes", "vmem_size_bytes"):
                v = getattr(info, name, None)
                if v:
                    return int(v)
        except Exception:
            pass
    return _DEFAULT_PHYS_VMEM


def _num_tensorcores():
    get_info = getattr(pltpu, "get_tpu_info", None)
    if get_info is not None:
        try:
            info = get_info()
            for name in ("num_tensorcores", "num_cores", "tensorcore_count",
                         "cores_per_chip"):
                v = getattr(info, name, None)
                if v:
                    return int(v)
        except Exception:
            pass
    return 0  # unknown


def _plan_blocks(B, d1, d2, itemsize):
    """Pick rows-per-block (tb), grid length, and vmem_limit for (B, d1, d2)."""
    phys = _physical_vmem_bytes()
    cores = _num_tensorcores()
    margin = 2 << 20
    # ~64 MiB scoped on v5e/v6e (128 MiB physical), ~32 MiB on v7x (64 MiB).
    vmem_limit = int(min(64 << 20, max(16 << 20, phys // 2)))

    row_bytes = _padded_tile_bytes((1, d1, d2), itemsize)  # (8,128)-padded
    ws_per_row = 4 * row_bytes  # input + output blocks, double-buffered
    target_block = max(row_bytes, vmem_limit // 8)  # ~8 MiB v5e/v6e, ~4 MiB v7x

    tb_target = max(1, target_block // row_bytes)
    tb_fit = max(1, (vmem_limit - margin) // ws_per_row)
    tb = max(1, min(B, tb_target, tb_fit))

    # Keep >= 2 (roughly balanced) grid steps only when there may be 2 TCs
    # (v7x megacore); on single-TC chips this would just shrink blocks.
    if B > 1 and (cores == 0 or cores >= 2):
        tb = min(tb, max(1, pl.cdiv(B, 2)))

    grid_len = pl.cdiv(B, tb)

    # If even one row overflows the scoped limit, raise it toward physical.
    # TODO(synk): replace with the L-tiled accumulator path for huge rows.
    needed = tb * ws_per_row + margin
    if needed > vmem_limit:
        vmem_limit = int(min(needed, max(phys - (8 << 20), 16 << 20)))

    return int(tb), int(grid_len), int(vmem_limit)


# --------------------------------- kernels ---------------------------------- #

def _norm_kernel(x_ref, w_ref, b_ref, o_ref, mean_ref, stdev_ref, *, eps,
                 red_axis):
    # x_ref: (tb, L, C) with red_axis=1, or (tb, C, L) with red_axis=2.
    x = x_ref[...].astype(jnp.float32)
    mean = jnp.mean(x, axis=red_axis, keepdims=True)
    d = x - mean                                       # centered (exact var)
    var = jnp.mean(d * d, axis=red_axis, keepdims=True)
    inv_std = jax.lax.rsqrt(var + eps)                 # EUP slot
    stdev = (var + eps) * inv_std                      # == sqrt(var + eps)

    # (x - mean) / stdev * w + b  ==  d * (inv_std * w) + b
    scale = inv_std * w_ref[...]
    o_ref[...] = (d * scale + b_ref[...]).astype(o_ref.dtype)
    mean_ref[...] = mean.astype(mean_ref.dtype)
    stdev_ref[...] = stdev.astype(stdev_ref.dtype)


def _denorm_kernel(x_ref, mean_ref, stdev_ref, inv_w_ref, b_ref, o_ref):
    # (x - b) / (w + eps^2) * stdev + mean  ==  x*scale + shift
    x = x_ref[...].astype(jnp.float32)
    scale = stdev_ref[...] * inv_w_ref[...]
    shift = mean_ref[...] - b_ref[...] * scale
    o_ref[...] = (x * scale + shift).astype(o_ref.dtype)


# -------------------------------- wrappers ---------------------------------- #

def revin_norm(x, affine_weight, affine_bias, eps=EPS):
    """x: (B, L, C). Returns (x_norm, mean, stdev) with mean/stdev (B, 1, C)."""
    B, L, C = x.shape
    lane_dense = C >= 128  # channel-minor is already lane-dense

    if lane_dense:
        xk = x
        d1, d2 = L, C
        w3 = affine_weight.reshape(1, 1, C).astype(jnp.float32)
        b3 = affine_bias.reshape(1, 1, C).astype(jnp.float32)
        red_axis = 1
        stat_tail = (1, C)
    else:
        # Lane-dense repack: put the (long) sequence axis on the 128-lane axis.
        xk = jnp.transpose(x, (0, 2, 1))               # (B, C, L)
        d1, d2 = C, L
        w3 = affine_weight.reshape(1, C, 1).astype(jnp.float32)
        b3 = affine_bias.reshape(1, C, 1).astype(jnp.float32)
        red_axis = 2
        stat_tail = (C, 1)

    tb, grid_len, vmem_limit = _plan_blocks(B, d1, d2, x.dtype.itemsize)
    kernel = functools.partial(_norm_kernel, eps=eps, red_axis=red_axis)

    out_shapes = (
        jax.ShapeDtypeStruct((B, d1, d2), x.dtype),
        jax.ShapeDtypeStruct((B,) + stat_tail, jnp.float32),
        jax.ShapeDtypeStruct((B,) + stat_tail, jnp.float32),
    )

    xn, mean_s, stdev_s = pl.pallas_call(
        kernel,
        out_shape=out_shapes,
        grid_spec=pltpu.PrefetchScalarGridSpec(
            num_scalar_prefetch=0,
            grid=(grid_len,),
            in_specs=[
                pl.BlockSpec((tb, d1, d2), lambda b: (b, 0, 0)),
                pl.BlockSpec(w3.shape, lambda b: (0, 0, 0)),
                pl.BlockSpec(b3.shape, lambda b: (0, 0, 0)),
            ],
            out_specs=[
                pl.BlockSpec((tb, d1, d2), lambda b: (b, 0, 0)),
                pl.BlockSpec((tb,) + stat_tail, lambda b: (b, 0, 0)),
                pl.BlockSpec((tb,) + stat_tail, lambda b: (b, 0, 0)),
            ],
        ),
        compiler_params=pltpu.CompilerParams(
            dimension_semantics=("parallel",),
            vmem_limit_bytes=vmem_limit,
        ),
    )(xk, w3, b3)

    if lane_dense:
        return xn, mean_s, stdev_s
    # (B, C, L) -> (B, L, C); (B, C, 1) -> (B, 1, C) (pure reshape, same order).
    return (jnp.transpose(xn, (0, 2, 1)),
            mean_s.reshape(B, 1, C),
            stdev_s.reshape(B, 1, C))


def revin_denorm(x, mean, stdev, affine_weight, affine_bias, eps=EPS):
    """x: (B, L, C); mean/stdev: (B, 1, C). Returns denormalized x."""
    B, L, C = x.shape
    # Hoist the per-channel reciprocal out of the per-element path (C-length op).
    inv_w = 1.0 / (affine_weight.astype(jnp.float32) + eps * eps)
    lane_dense = C >= 128

    if lane_dense:
        xk = x
        mk = mean.astype(jnp.float32)
        sk = stdev.astype(jnp.float32)
        inv_w3 = inv_w.reshape(1, 1, C)
        b3 = affine_bias.reshape(1, 1, C).astype(jnp.float32)
        d1, d2 = L, C
        stat_tail = (1, C)
    else:
        xk = jnp.transpose(x, (0, 2, 1))               # (B, C, L)
        mk = mean.astype(jnp.float32).reshape(B, C, 1)
        sk = stdev.astype(jnp.float32).reshape(B, C, 1)
        inv_w3 = inv_w.reshape(1, C, 1)
        b3 = affine_bias.reshape(1, C, 1).astype(jnp.float32)
        d1, d2 = C, L
        stat_tail = (C, 1)

    tb, grid_len, vmem_limit = _plan_blocks(B, d1, d2, x.dtype.itemsize)

    out = pl.pallas_call(
        _denorm_kernel,
        out_shape=jax.ShapeDtypeStruct((B, d1, d2), x.dtype),
        grid_spec=pltpu.PrefetchScalarGridSpec(
            num_scalar_prefetch=0,
            grid=(grid_len,),
            in_specs=[
                pl.BlockSpec((tb, d1, d2), lambda b: (b, 0, 0)),
                pl.BlockSpec((tb,) + stat_tail, lambda b: (b, 0, 0)),
                pl.BlockSpec((tb,) + stat_tail, lambda b: (b, 0, 0)),
                pl.BlockSpec(inv_w3.shape, lambda b: (0, 0, 0)),
                pl.BlockSpec(b3.shape, lambda b: (0, 0, 0)),
            ],
            out_specs=pl.BlockSpec((tb, d1, d2), lambda b: (b, 0, 0)),
        ),
        compiler_params=pltpu.CompilerParams(
            dimension_semantics=("parallel",),
            vmem_limit_bytes=vmem_limit,
        ),
    )(xk, mk, sk, inv_w3, b3)

    return out if lane_dense else jnp.transpose(out, (0, 2, 1))


# --------------------------- reference (pure JAX) --------------------------- #

def _ref_norm(x, w, b, eps=EPS):
    mean = jnp.mean(x, axis=1, keepdims=True)
    var = jnp.mean((x - mean) ** 2, axis=1, keepdims=True)
    stdev = jnp.sqrt(var + eps)
    xn = (x - mean) / stdev
    return xn * w.reshape(1, 1, -1) + b.reshape(1, 1, -1), mean, stdev


def _ref_denorm(x, mean, stdev, w, b, eps=EPS):
    xd = (x - b.reshape(1, 1, -1)) / (w.reshape(1, 1, -1) + eps * eps)
    return xd * stdev + mean


# --------------------------------- main ------------------------------------- #

if __name__ == "__main__":
    key = jax.random.PRNGKey(0)
    B, L, C = 2, 16, 8          # batch, seq length, num_features
    x = jax.random.normal(key, (B, L, C), dtype=jnp.float32) * 3.0 + 1.5

    # Deterministic parameter init (matches nn.Parameter(ones/zeros)):
    affine_weight = jnp.ones((C,), dtype=jnp.float32)
    affine_bias = jnp.zeros((C,), dtype=jnp.float32)

    # mode == 'norm'
    x_norm, mean, stdev = revin_norm(x, affine_weight, affine_bias)
    x_norm = jax.block_until_ready(x_norm)
    mean = jax.block_until_ready(mean)
    stdev = jax.block_until_ready(stdev)

    # mode == 'denorm' (uses stats produced by the 'norm' call)
    x_denorm = revin_denorm(x_norm, mean, stdev, affine_weight, affine_bias)
    x_denorm = jax.block_until_ready(x_denorm)

    # correctness check vs pure-JAX reference
    xn_ref, mean_ref, stdev_ref = _ref_norm(x, affine_weight, affine_bias)
    xd_ref = _ref_denorm(xn_ref, mean_ref, stdev_ref, affine_weight, affine_bias)

    assert jnp.allclose(x_norm, xn_ref, atol=1e-5, rtol=1e-5)
    assert jnp.allclose(mean, mean_ref, atol=1e-5, rtol=1e-5)
    assert jnp.allclose(stdev, stdev_ref, atol=1e-5, rtol=1e-5)
    assert jnp.allclose(x_denorm, xd_ref, atol=1e-5, rtol=1e-5)
    assert jnp.allclose(x_denorm, x, atol=1e-4, rtol=1e-4)  # round-trip

    print("KERNEL_OK")
</pallas_src>

<mosaic_0001>
module attributes {stable_mosaic.version = 11 : i64} {
  func.func @_norm_kernel(%arg0: i32, %arg1: memref<1x8x16xf32, #tpu.memory_space<vmem>>, %arg2: memref<1x8x1xf32, #tpu.memory_space<vmem>>, %arg3: memref<1x8x1xf32, #tpu.memory_space<vmem>>, %arg4: memref<1x8x16xf32, #tpu.memory_space<vmem>>, %arg5: memref<1x8x1xf32, #tpu.memory_space<vmem>>, %arg6: memref<1x8x1xf32, #tpu.memory_space<vmem>>) attributes {dimension_semantics = [#tpu.dimension_semantics<parallel>], iteration_bounds = array<i64: 2>, scalar_prefetch = 0 : i64, scratch_operands = 0 : i64, tpu.core_type = #tpu.core_type<tc>, window_params = [{transform_indices = @transform_0, window_bounds = array<i64: 1, 8, 16>}, {pipeline_mode = #tpu.pipeline_mode<synchronous>, transform_indices = @transform_1, window_bounds = array<i64: 1, 8, 1>}, {pipeline_mode = #tpu.pipeline_mode<synchronous>, transform_indices = @transform_2, window_bounds = array<i64: 1, 8, 1>}, {transform_indices = @transform_3, window_bounds = array<i64: 1, 8, 16>}, {transform_indices = @transform_4, window_bounds = array<i64: 1, 8, 1>}, {transform_indices = @transform_5, window_bounds = array<i64: 1, 8, 1>}]} {
    %c0 = arith.constant 0 : index
    %c0_0 = arith.constant 0 : index
    %c0_1 = arith.constant 0 : index
    %0 = vector.load %arg1[%c0, %c0_0, %c0_1] : memref<1x8x16xf32, #tpu.memory_space<vmem>>, vector<1x8x16xf32>
    %cst = arith.constant dense<0.000000e+00> : vector<1x8xf32>
    %1 = vector.multi_reduction <add>, %0, %cst [2] : vector<1x8x16xf32> to vector<1x8xf32>
    %2 = vector.shape_cast %1 : vector<1x8xf32> to vector<1x8x1xf32>
    %cst_2 = arith.constant 1.600000e+01 : f32
    %3 = vector.broadcast %cst_2 : f32 to vector<1x8x1xf32>
    %4 = arith.divf %2, %3 : vector<1x8x1xf32>
    %5 = vector.broadcast %4 : vector<1x8x1xf32> to vector<1x8x16xf32>
    %6 = arith.subf %0, %5 : vector<1x8x16xf32>
    %7 = arith.mulf %6, %6 : vector<1x8x16xf32>
    %cst_3 = arith.constant dense<0.000000e+00> : vector<1x8xf32>
    %8 = vector.multi_reduction <add>, %7, %cst_3 [2] : vector<1x8x16xf32> to vector<1x8xf32>
    %9 = vector.shape_cast %8 : vector<1x8xf32> to vector<1x8x1xf32>
    %cst_4 = arith.constant 1.600000e+01 : f32
    %10 = vector.broadcast %cst_4 : f32 to vector<1x8x1xf32>
    %11 = arith.divf %9, %10 : vector<1x8x1xf32>
    %cst_5 = arith.constant 9.99999974E-6 : f32
    %12 = vector.broadcast %cst_5 : f32 to vector<1x8x1xf32>
    %13 = arith.addf %11, %12 : vector<1x8x1xf32>
    %14 = math.rsqrt %13 : vector<1x8x1xf32>
    %cst_6 = arith.constant 9.99999974E-6 : f32
    %15 = vector.broadcast %cst_6 : f32 to vector<1x8x1xf32>
    %16 = arith.addf %11, %15 : vector<1x8x1xf32>
    %17 = arith.mulf %16, %14 : vector<1x8x1xf32>
    %c0_7 = arith.constant 0 : index
    %c0_8 = arith.constant 0 : index
    %c0_9 = arith.constant 0 : index
    %18 = vector.load %arg2[%c0_7, %c0_8, %c0_9] : memref<1x8x1xf32, #tpu.memory_space<vmem>>, vector<1x8x1xf32>
    %19 = arith.mulf %14, %18 : vector<1x8x1xf32>
    %20 = vector.broadcast %19 : vector<1x8x1xf32> to vector<1x8x16xf32>
    %21 = arith.mulf %6, %20 : vector<1x8x16xf32>
    %c0_10 = arith.constant 0 : index
    %c0_11 = arith.constant 0 : index
    %c0_12 = arith.constant 0 : index
    %22 = vector.load %arg3[%c0_10, %c0_11, %c0_12] : memref<1x8x1xf32, #tpu.memory_space<vmem>>, vector<1x8x1xf32>
    %23 = vector.broadcast %22 : vector<1x8x1xf32> to vector<1x8x16xf32>
    %24 = arith.addf %21, %23 : vector<1x8x16xf32>
    %c0_13 = arith.constant 0 : index
    %c0_14 = arith.constant 0 : index
    %c0_15 = arith.constant 0 : index
    %25 = vector.load %arg4[%c0_13, %c0_14, %c0_15] : memref<1x8x16xf32, #tpu.memory_space<vmem>>, vector<1x8x16xf32>
    tpu.vector_store %arg4[%c0_13, %c0_14, %c0_15], %24 {strides = array<i32>} : memref<1x8x16xf32, #tpu.memory_space<vmem>>, vector<1x8x16xf32>,
    %c0_16 = arith.constant 0 : index
    %c0_17 = arith.constant 0 : index
    %c0_18 = arith.constant 0 : index
    %26 = vector.load %arg5[%c0_16, %c0_17, %c0_18] : memref<1x8x1xf32, #tpu.memory_space<vmem>>, vector<1x8x1xf32>
    tpu.vector_store %arg5[%c0_16, %c0_17, %c0_18], %4 {strides = array<i32>} : memref<1x8x1xf32, #tpu.memory_space<vmem>>, vector<1x8x1xf32>,
    %c0_19 = arith.constant 0 : index
    %c0_20 = arith.constant 0 : index
    %c0_21 = arith.constant 0 : index
    %27 = vector.load %arg6[%c0_19, %c0_20, %c0_21] : memref<1x8x1xf32, #tpu.memory_space<vmem>>, vector<1x8x1xf32>
    tpu.vector_store %arg6[%c0_19, %c0_20, %c0_21], %17 {strides = array<i32>} : memref<1x8x1xf32, #tpu.memory_space<vmem>>, vector<1x8x1xf32>,
    return
  }
  func.func @transform_0(%arg0: i32) -> (i32, i32, i32) {
    %c0_i32 = arith.constant 0 : i32
    %c0_i32_0 = arith.constant 0 : i32
    %c0_i32_1 = arith.constant 0 : i32
    return %arg0, %c0_i32, %c0_i32_0 : i32, i32, i32
  }
  func.func @transform_1(%arg0: i32) -> (i32, i32, i32) {
    %c0_i32 = arith.constant 0 : i32
    %c0_i32_0 = arith.constant 0 : i32
    %c0_i32_1 = arith.constant 0 : i32
    %c0_i32_2 = arith.constant 0 : i32
    return %c0_i32, %c0_i32_0, %c0_i32_1 : i32, i32, i32
  }
  func.func @transform_2(%arg0: i32) -> (i32, i32, i32) {
    %c0_i32 = arith.constant 0 : i32
    %c0_i32_0 = arith.constant 0 : i32
    %c0_i32_1 = arith.constant 0 : i32
    %c0_i32_2 = arith.constant 0 : i32
    return %c0_i32, %c0_i32_0, %c0_i32_1 : i32, i32, i32
  }
  func.func @transform_3(%arg0: i32) -> (i32, i32, i32) {
    %c0_i32 = arith.constant 0 : i32
    %c0_i32_0 = arith.constant 0 : i32
    %c0_i32_1 = arith.constant 0 : i32
    return %arg0, %c0_i32, %c0_i32_0 : i32, i32, i32
  }
  func.func @transform_4(%arg0: i32) -> (i32, i32, i32) {
    %c0_i32 = arith.constant 0 : i32
    %c0_i32_0 = arith.constant 0 : i32
    %c0_i32_1 = arith.constant 0 : i32
    return %arg0, %c0_i32, %c0_i32_0 : i32, i32, i32
  }
  func.func @transform_5(%arg0: i32) -> (i32, i32, i32) {
    %c0_i32 = arith.constant 0 : i32
    %c0_i32_0 = arith.constant 0 : i32
    %c0_i32_1 = arith.constant 0 : i32
    return %arg0, %c0_i32, %c0_i32_0 : i32, i32, i32
  }
}

</mosaic_0001>

<bundles_post_ra>
// kernel: tpu_custom_call.1
= control target key start
LH: loop header
LB: loop body
LE: loop exit
PB: predicated region body
PF: predicated region fallthrough
CT: control target
= control target key end

     0   :  { %11 = vsyncpa [#allocation3], 0  ;;  %s665_s0 = inlined_call_operand.vmem [shape: f32[2,8,16], index: 0, kind: input, shape index: {}]   ;;  %s666_s1 = inlined_call_operand.vmem [shape: f32[1,8,1], index: 1, kind: input, shape index: {}]   ;;  %s667_s2 = inlined_call_operand.vmem [shape: f32[1,8,1], index: 2, kind: input, shape index: {}]   ;;  %s668_s3 = inlined_call_operand.hbm [shape: f32[2,8,16], index: 3, kind: output, shape index: {0}]   ;;  %s669_s4 = inlined_call_operand.vmem [shape: f32[2,8,1], index: 4, kind: output, shape index: {1}]   ;;  %s670_s5 = inlined_call_operand.vmem [shape: f32[2,8,1], index: 5, kind: output, shape index: {2}]  }
   0x1   :  { %13 = vsyncpa [#allocation3 + $0x1], 0  ;;  %s561_s18 = smov 0   ;;  %s563_s19 = smov 0  }
   0x2   :  { %s565_s20 = smov 0   ;;  %s567_s21 = smov 0  }
   0x3 LB: > { %s582_s22 = sadd.s32 4294967295, %s527_s21   ;;  %s411_s23 = sadd.s32 4294967294, %s527_s21   ;;  %s527_s21 = sphi %s567_s21, %s676_s21   ;;  %s523_s20 = sphi %s565_s20, %s675_s20   ;;  %s519_s19 = sphi %s563_s19, %s674_s19   ;;  %s515_s18 = sphi %s561_s18, %s673_s18  }
   0x4   : > { %s586_s24 = sadd.s32 1, %s527_s21   ;;  %s94_s25 = sadd.s32 1, %s523_s20 }
   0x5   : > { %s91_s26 = ssub.s32 %s527_s21, %s586_s24  ;;  %p104_p0 = scmp.ne.s32.totalorder %s523_s20, %s519_s19 }
   0x6   : > { %p92_p1 = scmp.eq.s32.totalorder %s91_s26, 0  ;;  %p105_p2 = scmp.eq.s32.totalorder %s582_s22, 1 }
   0x7   : > { %p110_p3 = scmp.ne.s32.totalorder %s519_s19, %s515_s18  ;;  %p111_p4 = scmp.eq.s32.totalorder %s411_s23, 1 }
   0x8   : > { %s597_s27 = scalar_select %p92_p1, %s523_s20, %s94_s25  }
   0x9   : > { %p599_p5 = por %p105_p2, %p104_p0  ;;  %p603_p6 = por %p111_p4, %p110_p3 }
   0xa   : > { %p414_p7 = scmp.ge.s32.totalorder %s527_s21, 1  ;;  %p194_p8 = scmp.lt.s32.totalorder %s527_s21, 3 }
   0xc   : > { %p195_p9 = pnand %p414_p7, %p194_p8 }
   0xd   : > { %p229_p10 = scmp.lt.s32.totalorder (!%p195_p9), %s582_s22, 1  ;;  %s214_s26 = sand.u32 (!%p195_p9), 1, %s519_s19  }
   0xe   : > { %198 = sbr.rel (%p195_p9) target bundleno = 471 (0x1d7), region = 32  ;;  %s420_s7 = sshll.u32 (!%p195_p9), %s582_s22, 7 }
   0xf   : > { %s296_s11 = scalar_lea.hbm (!%p195_p9), %s668_s3, %s420_s7  ;;  %s530_s14 = smov (!%p195_p9), [#allocation2]  }
  0x13   : > { %s230_s30 = scalar_select %p229_p10, %s582_s22, 1  ;;  %vm242_vm0 = vcmask 130048   ;;  %vm273_vm1 = vcmask 7168   ;;  %v529_v7 = vmov 0   ;;  %v257_v11 = vld [vmem:[%s666_s1] sm:$0xff] }
  0x14   : > { %463 = vset.pattern.permute.xlu1 %v529_v7  ;;  %464 = vset.pattern.permute.xlu0 %v529_v7  ;;  %v265_v15 = vld [vmem:[%s667_s2] sm:$0xff]  ;;  %s471_s22 = sshll.u32 %s530_s14, 4  ;;  %s472_s22 = int_to_ptr.vmem [resolvable:$false] %s471_s22 }
  0x15   : > { %s416_s6 = sshll.u32 %s230_s30, 3  ;;  %s415_s30 = sshll.u32 %s214_s26, 3 }
  0x16   : > { %s232_s9 = scalar_lea.vmem %s665_s0, %s416_s6  ;;  %s236_s12 = scalar_lea.vmem %s669_s4, %s416_s6 }
  0x17   : > { %v241_v0 = vld [vmem:[%s232_s9] sm:$0xff]  ;;  %s240_s17 = scalar_lea.vmem %s670_s5, %s416_s6  ;;  %s216_s8 = scalar_lea.vmem [#allocation2], %s415_s30 }
  0x18   : > { %v243_v1 = vsel %vm242_vm0, %v241_v0, 0.0  ;;  %s298_s9 = sshll.u32 %s216_s8, 4  ;;  %s473_s15 = scalar_lea.vmem %s472_s22, 256  ;;  %s299_s9 = int_to_ptr.vmem [resolvable:$true] %s298_s9 }
  0x19   : > { %244 = vadd.xlane.f32.xlu0 %v243_v1  ;;  %s467_s13 = scalar_lea.vmem %s299_s9, 128  ;;  %p474_p0 = scmp.lt.s32.totalorder %s299_s9, %s472_s22 }
  0x1a   : > { %p468_p11 = scmp.ne.s32.totalorder %s299_s9, %s467_s13  ;;  %p475_p1 = scmp.lt.s32.totalorder %s473_s15, %s467_s13 }
  0x1c   : > { %p469_p12 = pnand %p468_p11, %p599_p5  ;;  %p476_p2 = por %p475_p1, %p474_p0 }
  0x1e   : > { %p470_p13 = pneg %p469_p12 }
  0x20   : > { %p477_p3 = pnand %p476_p2, %p470_p13 }
  0xa2   : > { %v245_v2 = vpop.xlane.xlu0 %244 }
  0xa3   : > { %v247_v3 = vmul.f32 0.0625, %v245_v2 }
  0xa5   : > { %v248_v4 = vsub.f32 %v241_v0, %v247_v3  ;;  %274 = vst.msk [vmem:[%s236_s12] sm:$0xff] %vm273_vm1, %v247_v3  ;;  %s277_s12 = scalar_lea.sflag [#allocation3], %s214_s26 }
  0xa7   : > { %v249_v5 = vmul.f32 %v248_v4, %v248_v4 }
  0xa9   : > { %v250_v6 = vsel %vm242_vm0, %v249_v5, 0.0 }
  0xaa   : > { %251 = vadd.xlane.f32.xlu0 %v250_v6 }
 0x133   : > { %v252_v8 = vpop.xlane.xlu0 %251 }
 0x134   : > { %v253_v9 = vmul.f32 0.0625, %v252_v8 }
 0x136   : > { %v254_v10 = vadd.f32 1e-05, %v253_v9 }
 0x138   : > { %465 = vrsqrt.f32 %v254_v10 }
 0x145   : > { %v466_v12 = vpop.eup %465 }
 0x146   : > { %v256_v13 = vmul.f32 %v466_v12, %v254_v10  ;;  %v258_v14 = vmul.f32 %v466_v12, %v257_v11 }
 0x148   : > { %275 = vst.msk [vmem:[%s240_s17] sm:$0xff] %vm273_vm1, %v256_v13  ;;  %261 = vperm.xlu1 %463, %v258_v14  }
 0x14c   : > { %268 = vperm.xlu1 %463, %v265_v15  }
 0x1c3   : > { %v262_v16 = vpop.permute.xlu1 %261 }
 0x1c4   : > { %v264_v17 = vmul.f32 %v262_v16, %v248_v4 }
 0x1c7   : > { %v269_v18 = vpop.permute.xlu1 %268 }
 0x1c8   : > { %v271_v19 = vadd.f32 %v269_v18, %v264_v17 }
 0x1ca   : > { %272 = vst.msk [vmem:[%s216_s8] sm:$0xff] %vm242_vm0, %v271_v19 }
 0x1cb   : > { %480 = shalt.err (!%p477_p3)
}
 0x1cc   : > { %s481_s16 = scalar_lea.hbm %s296_s11, 128  ;;  %s485_s25 = scalar_lea.hbm %s668_s3, 256 }
 0x1cd   : > { %p482_p4 = scmp.ne.s32.totalorder %s296_s11, %s481_s16  ;;  %p486_p9 = scmp.lt.s32.totalorder %s296_s11, %s668_s3 }
 0x1ce   : > { %p487_p10 = scmp.lt.s32.totalorder %s485_s25, %s481_s16 }
 0x1cf   : > { %p483_p7 = pnand %p482_p4, %p599_p5 }
 0x1d0   : > { %p488_p11 = por %p487_p10, %p486_p9 }
 0x1d1   : > { %p484_p8 = pneg %p483_p7 }
 0x1d3   : > { %p489_p12 = pnand %p488_p11, %p484_p8 }
 0x1d5   : > { %492 = shalt.err (!%p489_p12)
}
 0x1d6   : > { %423 = dma.vmem_to_hbm [thread:$0]  (%p599_p5), %s299_s9, 128, %s296_s11, %s277_s12  }
 0x1d7 PF: > { %p429_p13 = scmp.ge.s32.totalorder %s527_s21, 2  ;;  %s316_s7 = sand.u32 1, %s515_s18  }
 0x1d8   : > { %s317_s8 = scalar_lea.sflag [#allocation3], %s316_s7 }
 0x1d9   : > { %p426_p0 = pnand %p429_p13, %p603_p6 }
 0x1db   : > { %p427_p1 = pneg %p426_p0 }
 0x1dd   : > { %510 = dma.done.wait (%p427_p1), %s317_s8, 128  }
 0x1de   : > { %512 = vsyncadd (%p427_p1), %s317_s8, 4294967168  ;;  %p16_p2 = scmp.ge.s32.totalorder %s586_s24, 4   ;;  %s673_s18 = smov %s519_s19 }
 0x1df   : > { %s674_s19 = smov %s523_s20  ;;  %s675_s20 = smov %s597_s27 }
 0x1e0   : > { %s676_s21 = smov %s586_s24  ;;  %18 = sbr.rel (!%p16_p2) target bundleno = 3 (0x3), region = 91 }
 0x1e5   :  { %336 = vsyncpa [#allocation3], 1 }
 0x1e6   :  { %338 = vsyncpa [#allocation3 + $0x1], 1 }

</bundles_post_ra>
